<compile_context>
chip_gen: v5e
topology: v5e:2x2
jax: 0.10.0
libtpu: 0.0.40
codegen_flags: <defaults>
</compile_context>

<pallas_src>
import math

import jax
import jax.numpy as jnp
from jax.experimental import pallas as pl
from jax.experimental.pallas import tpu as pltpu


_LANE = 128
_SUBLANE_MULT = {4: 8, 2: 16, 1: 32}   # itemsize -> native sublane multiple


def _add_bias_kernel(x_ref, b_ref, o_ref):
    # x: (TR, TC); b: (TR, 1) or (1, TC). Pure VPU add with an implicit
    # broadcast; no cross-lane relayout inside the kernel.
    o_ref[...] = x_ref[...] + b_ref[...]


def _vmem_cap_bytes():
    try:
        cap = int(getattr(pltpu.get_tpu_info(), "vmem_capacity_bytes"))
        if cap > 0:
            return cap
    except Exception:
        pass
    return 64 << 20          # conservative fallback: v7x per-TensorCore VMEM


def _target_tile_bytes():
    # Bigger tiles amortize the ~0.35us per-grid-step overhead; stay smaller on
    # v7x (64 MiB VMEM), larger on v5e/v6e (128 MiB).
    return (8 << 20) if _vmem_cap_bytes() >= (96 << 20) else (4 << 20)


def _padded_tile_bytes(r, c, itemsize, sub):
    """Real VMEM footprint of an (r, c) block after lane/sublane padding."""
    rp = -(-r // sub) * sub
    cp = -(-c // _LANE) * _LANE
    return rp * cp * itemsize


def _tile_sizes(rows, cols, dtype, target_bytes):
    """Pick (tile_rows, tile_cols) ~target_bytes of *padded* VMEM per buffer."""
    itemsize = jnp.dtype(dtype).itemsize
    sub = _SUBLANE_MULT.get(itemsize, 8)
    # Lane (fast) axis: full extent if it fits, else a large multiple of 128.
    max_tc = 4096 if target_bytes >= (6 << 20) else 2048
    tc = cols if cols <= max_tc else max_tc
    cp = -(-tc // _LANE) * _LANE
    # Sublane axis: fill the padded-byte budget, rounded to the dtype multiple.
    max_r = max(sub, target_bytes // (cp * itemsize))
    if rows <= max_r:
        tr = rows                                 # block == full dim is legal
    else:
        tr = max(sub, (max_r // sub) * sub)
    return tr, tc


def _split_for_megacore(tr, tc, rows, cols, itemsize, sub):
    """Ensure >=2 blocks on a 'parallel' axis for mid-size single-block grids
    so both v7x TensorCores get work and DMA/compute overlap exists."""
    if pl.cdiv(rows, tr) * pl.cdiv(cols, tc) > 1:
        return tr, tc
    if rows * cols * itemsize <= (1 << 20):       # tiny array: not worth it
        return tr, tc
    if rows >= 2 * sub:
        half = max(sub, ((rows // 2) // sub) * sub)
        if half < rows:
            return half, tc
    if cols >= 2 * _LANE:
        half_c = max(_LANE, ((cols // 2) // _LANE) * _LANE)
        if half_c < cols:
            return tr, half_c
    return tr, tc


def _tiled_bias_add(x2d, b2d, tile=None):
    """x2d: (R, C); b2d: (R, 1) or (1, C). Returns x2d + b2d, tiled/pipelined."""
    rows, cols = x2d.shape
    itemsize = jnp.dtype(x2d.dtype).itemsize
    sub = _SUBLANE_MULT.get(itemsize, 8)

    if tile is None:
        tr, tc = _tile_sizes(rows, cols, x2d.dtype, _target_tile_bytes())
        tr, tc = _split_for_megacore(tr, tc, rows, cols, itemsize, sub)
    else:
        tr, tc = tile

    grid = (pl.cdiv(rows, tr), pl.cdiv(cols, tc))

    br, bc = b2d.shape
    b_block = (tr if br > 1 else 1, tc if bc > 1 else 1)

    def b_index(i, j, _br=br, _bc=bc):
        return (i if _br > 1 else 0, j if _bc > 1 else 0)

    # VMEM budget from the padded footprint: x + out double-buffered,
    # bias double-buffered, plus margin; never more than half of physical VMEM.
    tile_bytes = _padded_tile_bytes(tr, tc, itemsize, sub)
    bias_bytes = _padded_tile_bytes(b_block[0], b_block[1], itemsize, sub)
    need = 4 * tile_bytes + 2 * bias_bytes + (4 << 20)
    vmem_limit = int(min(max(need, 16 << 20), _vmem_cap_bytes() // 2))

    return pl.pallas_call(
        _add_bias_kernel,
        out_shape=jax.ShapeDtypeStruct(x2d.shape, x2d.dtype),
        grid=grid,
        in_specs=[
            pl.BlockSpec((tr, tc), lambda i, j: (i, j)),
            pl.BlockSpec(b_block, b_index),
        ],
        out_specs=pl.BlockSpec((tr, tc), lambda i, j: (i, j)),
        compiler_params=pltpu.CompilerParams(
            dimension_semantics=("parallel", "parallel"),
            vmem_limit_bytes=vmem_limit,
        ),
    )(x2d, b2d)


def _row_group(rows, width, max_width=4096):
    """Largest g dividing `rows` s.t. g*width is a multiple of 128 and <= max_width.
    Returns 1 if no such grouping exists (fall back to the un-grouped layout)."""
    if width % _LANE == 0:
        return 1
    need = _LANE // math.gcd(width, _LANE)
    best, g = 1, need
    while g <= rows and g * width <= max_width:
        if rows % g == 0:
            best = g
        g += need
    return best


def _row_bias_add(x2d, bias_row, tile=None):
    """x2d: (R, W) plus broadcast of bias_row (W,) over rows; regroups rows so
    the lane axis is a multiple of 128 when a legal grouping exists."""
    R, W = x2d.shape
    g = _row_group(R, W) if tile is None else 1
    if g > 1:
        out = _tiled_bias_add(
            x2d.reshape(R // g, g * W),                 # free layout plumbing
            jnp.tile(bias_row, g).reshape(1, g * W),    # tiny pre-broadcast row
            tile=tile,
        )
        return out.reshape(R, W)
    return _tiled_bias_add(x2d, bias_row.reshape(1, W), tile=tile)


def add_bias(x, bias_param, tile=None):
    """Pallas implementation of AddBias.forward.

    bias_param: (C, 1) array, mirroring nn.Parameter(bias.unsqueeze(1)).
    tile: optional (tile_rows, tile_cols) override for testing multi-block grids.
    """
    # TODO(synk): when AddBias follows a matmul/conv (the usual case), fuse this
    # add into that kernel's epilogue instead — saves a full activation HBM
    # round-trip, which beats any tuning of this standalone bandwidth-bound op.
    C = bias_param.shape[0]
    bias_vec = bias_param.reshape(C).astype(x.dtype)

    if x.ndim == 2:
        # (N, C) + (1, C): per-column bias, grouped to lane-dense rows if C < 128.
        return _row_bias_add(x, bias_vec, tile=tile)

    N, Cx, H, W = x.shape
    assert Cx == C, "channel dim of x must match bias length"
    hw = H * W
    if hw < _LANE:
        # Small feature maps: keep the lane axis wide -> (N, C*H*W) + (1, C*H*W).
        out = _row_bias_add(x.reshape(N, C * hw), jnp.repeat(bias_vec, hw), tile=tile)
        return out.reshape(N, C, H, W)

    # Large feature maps: (N*C, H*W) is already lane-dense; bias as tiny column.
    x2 = x.reshape(N * C, hw)
    b_col = jnp.tile(bias_vec, N).reshape(N * C, 1)
    out = _tiled_bias_add(x2, b_col, tile=tile)
    return out.reshape(N, C, H, W)


if __name__ == "__main__":
    key = jax.random.PRNGKey(0)
    k_bias, k_x4, k_x2, k_x2b, k_x4s, k_x4b = jax.random.split(key, 6)

    C = 4
    # Deterministic parameter init: bias of length C stored as (C, 1), like
    # nn.Parameter(bias.unsqueeze(1)).
    bias_vec = jax.random.normal(k_bias, (C,), dtype=jnp.float32)
    bias_param = bias_vec.reshape(C, 1)

    # 4-D conv-activation case: NCHW (N=2, C=4, H=16, W=16) -> column-bias path.
    x4 = jax.random.normal(k_x4, (2, C, 16, 16), dtype=jnp.float32)
    y4 = jax.block_until_ready(add_bias(x4, bias_param))
    ref4 = x4 + bias_vec.reshape(1, C, 1, 1)
    assert y4.shape == x4.shape and y4.dtype == x4.dtype
    assert jnp.allclose(y4, ref4, atol=1e-6, rtol=1e-6)

    # 2-D case, small N (no legal lane-dense grouping -> fallback path): (8, 4).
    x2 = jax.random.normal(k_x2, (8, C), dtype=jnp.float32)
    y2 = jax.block_until_ready(add_bias(x2, bias_param))
    ref2 = x2 + bias_vec.reshape(1, C)
    assert y2.shape == x2.shape and y2.dtype == x2.dtype
    assert jnp.allclose(y2, ref2, atol=1e-6, rtol=1e-6)

    # 2-D case exercising the lane-dense regrouping: (256, 4) -> grouped rows.
    x2b = jax.random.normal(k_x2b, (256, C), dtype=jnp.float32)
    y2b = jax.block_until_ready(add_bias(x2b, bias_param))
    ref2b = x2b + bias_vec.reshape(1, C)
    assert jnp.allclose(y2b, ref2b, atol=1e-6, rtol=1e-6)

    # 4-D case with tiny feature map (H*W < 128) -> row-bias lane-dense path.
    x4s = jax.random.normal(k_x4s, (2, C, 4, 4), dtype=jnp.float32)
    y4s = jax.block_until_ready(add_bias(x4s, bias_param))
    ref4s = x4s + bias_vec.reshape(1, C, 1, 1)
    assert jnp.allclose(y4s, ref4s, atol=1e-6, rtol=1e-6)

    # 4-D case with a forced small tile to exercise the multi-step grid path:
    # (4, 4, 16, 16) -> flattened (16, 256), tile (8, 128) -> grid (2, 2).
    x4b = jax.random.normal(k_x4b, (4, C, 16, 16), dtype=jnp.float32)
    y4b = jax.block_until_ready(add_bias(x4b, bias_param, tile=(8, 128)))
    ref4b = x4b + bias_vec.reshape(1, C, 1, 1)
    assert y4b.shape == x4b.shape and y4b.dtype == x4b.dtype
    assert jnp.allclose(y4b, ref4b, atol=1e-6, rtol=1e-6)

    print("KERNEL_OK")
</pallas_src>

<mosaic_0001>
module attributes {stable_mosaic.version = 11 : i64} {
  func.func @_add_bias_kernel(%arg0: i32, %arg1: i32, %arg2: memref<8x256xf32, #tpu.memory_space<vmem>>, %arg3: memref<8x1xf32, #tpu.memory_space<vmem>>, %arg4: memref<8x256xf32, #tpu.memory_space<vmem>>) attributes {dimension_semantics = [#tpu.dimension_semantics<parallel>, #tpu.dimension_semantics<parallel>], iteration_bounds = array<i64: 1, 1>, scalar_prefetch = 0 : i64, scratch_operands = 0 : i64, tpu.core_type = #tpu.core_type<tc>, window_params = [{transform_indices = @transform_0, window_bounds = array<i64: 8, 256>}, {transform_indices = @transform_1, window_bounds = array<i64: 8, 1>}, {transform_indices = @transform_2, window_bounds = array<i64: 8, 256>}]} {
    %c0 = arith.constant 0 : index
    %c0_0 = arith.constant 0 : index
    %0 = vector.load %arg2[%c0, %c0_0] : memref<8x256xf32, #tpu.memory_space<vmem>>, vector<8x256xf32>
    %c0_1 = arith.constant 0 : index
    %c0_2 = arith.constant 0 : index
    %1 = vector.load %arg3[%c0_1, %c0_2] : memref<8x1xf32, #tpu.memory_space<vmem>>, vector<8x1xf32>
    %2 = vector.broadcast %1 : vector<8x1xf32> to vector<8x256xf32>
    %3 = arith.addf %0, %2 : vector<8x256xf32>
    %c0_3 = arith.constant 0 : index
    %c0_4 = arith.constant 0 : index
    %4 = vector.load %arg4[%c0_3, %c0_4] : memref<8x256xf32, #tpu.memory_space<vmem>>, vector<8x256xf32>
    tpu.vector_store %arg4[%c0_3, %c0_4], %3 {strides = array<i32>} : memref<8x256xf32, #tpu.memory_space<vmem>>, vector<8x256xf32>,
    return
  }
  func.func @transform_0(%arg0: i32, %arg1: i32) -> (i32, i32) {
    %c0_i32 = arith.constant 0 : i32
    return %arg0, %arg1 : i32, i32
  }
  func.func @transform_1(%arg0: i32, %arg1: i32) -> (i32, i32) {
    %c0_i32 = arith.constant 0 : i32
    %c0_i32_0 = arith.constant 0 : i32
    return %arg0, %c0_i32 : i32, i32
  }
  func.func @transform_2(%arg0: i32, %arg1: i32) -> (i32, i32) {
    %c0_i32 = arith.constant 0 : i32
    return %arg0, %arg1 : i32, i32
  }
}

</mosaic_0001>

<bundles_post_ra>
// kernel: tpu_custom_call.1
= control target key start
LH: loop header
LB: loop body
LE: loop exit
PB: predicated region body
PF: predicated region fallthrough
CT: control target
= control target key end

     0   :  { %7 = vsyncpa [#allocation3], 0  ;;  %s138_s0 = inlined_call_operand.hbm [shape: f32[8,256], index: 0, kind: input, shape index: {}]   ;;  %s139_s1 = inlined_call_operand.vmem [shape: f32[8,1], index: 1, kind: input, shape index: {}]   ;;  %s140_s2 = inlined_call_operand.hbm [shape: f32[8,256], index: 2, kind: output, shape index: {}]  }
   0x1   :  { %8 = vsyncpa [#allocation4], 0  ;;  %s14_s11 = sshll.u32 %s138_s0, 4  ;;  %s111_s12 = smov [#allocation2]   ;;  %s15_s11 = int_to_ptr.hbm [resolvable:$true] %s14_s11 }
   0x2   :  { %s16_s13 = sshll.u32 %s111_s12, 4  ;;  %s17_s13 = int_to_ptr.vmem [resolvable:$true] %s16_s13 }
   0x3   :  { %19 = dma.hbm_to_vmem [thread:$0]  %s15_s11, 256, %s17_s13, [#allocation3]  }
   0x4   :  { %107 = dma.done.wait [#allocation3], 256  }
   0x5   :  { %108 = vsyncadd [#allocation3], 4294967040  ;;  %v112_v0 = vmov 0   ;;  %v28_v1 = vld [vmem:[%s139_s1] sm:$0xff]  ;;  %v27_v3 = vld [vmem:[#allocation2 + $0x8] sm:$0xff]  ;;  %s113_s16 = smov [#allocation5]  }
   0x6   :  { %58 = vset.pattern.permute.xlu0 %v112_v0  ;;  %v26_v2 = vld [vmem:[#allocation2] sm:$0xff]  ;;  %s43_s17 = sshll.u32 %s113_s16, 4  ;;  %s45_s19 = sshll.u32 %s140_s2, 4  ;;  %s44_s17 = int_to_ptr.vmem [resolvable:$true] %s43_s17  ;;  %s46_s19 = int_to_ptr.hbm [resolvable:$true] %s45_s19 }
   0x7   :  { %31 = vperm.xlu0 %58, %v28_v1  }
  0x79   :  { %v32_v4 = vpop.permute.xlu0 %31 }
  0x7a   :  { %v34_v5 = vadd.f32 %v32_v4, %v26_v2  ;;  %v35_v6 = vadd.f32 %v32_v4, %v27_v3 }
  0x7c   :  { %36 = vst [vmem:[#allocation5] sm:$0xff] %v34_v5 }
  0x7d   :  { %37 = vst [vmem:[#allocation5 + $0x8] sm:$0xff] %v35_v6 }
  0x7e   :  { %48 = dma.vmem_to_hbm [thread:$0]  %s44_s17, 256, %s46_s19, [#allocation4]  }
  0x7f   :  { %109 = dma.done.wait [#allocation4], 256  }
  0x80   :  { %110 = vsyncadd [#allocation4], 4294967040 }
  0x81   :  { %53 = vsyncpa [#allocation3], 1 }
  0x82   :  { %54 = vsyncpa [#allocation4], 1 }

</bundles_post_ra>
